<compile_context>
chip_gen: v6e
topology: v6e:2x2x1
jax: 0.10.0
libtpu: 0.0.40
codegen_flags: <defaults>
</compile_context>

<pallas_src>
import functools
import math

import jax
import jax.numpy as jnp
import numpy as np
from jax import lax
from jax.experimental import pallas as pl
from jax.experimental.pallas import tpu as pltpu

_VMEM_LIMIT = 32 * 1024 * 1024  # scoped VMEM budget; safe on v5e/v6e/v7x


# ----------------------------------------------------------------------------
# Shared in-kernel attention core + output projection.
#   q/k/v: (S, d_model) bf16 values (heads concatenated along lanes)
#   bias : (S, S) f32 additive mask bias or None
#   ctx_ref: (S, d_model) f32 VMEM scratch (per-head results written in place)
# ----------------------------------------------------------------------------
def _attend_and_project(q, k, v, bias, w_o_ref, b_o_ref, o_ref, ctx_ref, *, h, d_k):
    for hh in range(h):                                  # static unroll over heads
        sl = slice(hh * d_k, (hh + 1) * d_k)
        # scores = q_h @ k_h^T via transposed contraction (no materialized k.T)
        s = lax.dot_general(q[:, sl], k[:, sl], (((1,), (1,)), ((), ())),
                            preferred_element_type=jnp.float32)      # (S, S) f32
        if bias is not None:
            s = s + bias
        # numerically stable softmax; normalization deferred past P@V
        m = jnp.max(s, axis=-1, keepdims=True)
        p = jnp.exp(s - m)
        denom = jnp.sum(p, axis=-1, keepdims=True)
        oh = jnp.dot(p.astype(v.dtype), v[:, sl],
                     preferred_element_type=jnp.float32)             # (S, d_k) f32
        # scale the small (S, d_k) output instead of the (S, S) prob matrix
        ctx_ref[:, sl] = oh * pl.reciprocal(denom, approx=True)
    # output projection on the fused context, single lane-dense store
    ctx = ctx_ref[...].astype(jnp.bfloat16)
    out = jnp.dot(ctx, w_o_ref[...], preferred_element_type=jnp.float32) + b_o_ref[...]
    o_ref[...] = out.astype(o_ref.dtype)


def _mask_bias(mask_ref):
    return jnp.where(mask_ref[...].astype(jnp.int32) == 0,
                     jnp.float32(-1000000000.0), jnp.float32(0.0))


# ----------------------------------------------------------------------------
# Fused self-attention kernel: x is read ONCE per batch element.
# ----------------------------------------------------------------------------
def _self_mha_kernel(*refs, h, d_k, has_mask):
    if has_mask:
        x_ref, w_qkv_ref, b_qkv_ref, w_o_ref, b_o_ref, mask_ref, o_ref, ctx_ref = refs
    else:
        x_ref, w_qkv_ref, b_qkv_ref, w_o_ref, b_o_ref, o_ref, ctx_ref = refs
        mask_ref = None
    d_model = h * d_k

    x = x_ref[...].astype(jnp.bfloat16)                          # (S, d_model)
    y = jnp.dot(x, w_qkv_ref[...],
                preferred_element_type=jnp.float32) + b_qkv_ref[...]   # (S, 3*d_model)
    q = y[:, :d_model].astype(jnp.bfloat16)
    k = y[:, d_model:2 * d_model].astype(jnp.bfloat16)
    v = y[:, 2 * d_model:].astype(jnp.bfloat16)

    bias = _mask_bias(mask_ref) if mask_ref is not None else None
    _attend_and_project(q, k, v, bias, w_o_ref, b_o_ref, o_ref, ctx_ref, h=h, d_k=d_k)


# ----------------------------------------------------------------------------
# Fused cross-attention kernel (distinct q/k/v inputs), same resident weights.
# ----------------------------------------------------------------------------
def _cross_mha_kernel(*refs, h, d_k, has_mask):
    if has_mask:
        (xq_ref, xk_ref, xv_ref, w_qkv_ref, b_qkv_ref,
         w_o_ref, b_o_ref, mask_ref, o_ref, ctx_ref) = refs
    else:
        (xq_ref, xk_ref, xv_ref, w_qkv_ref, b_qkv_ref,
         w_o_ref, b_o_ref, o_ref, ctx_ref) = refs
        mask_ref = None
    d_model = h * d_k

    w = w_qkv_ref[...]
    b = b_qkv_ref[...]

    def proj(x_ref, lo):
        x = x_ref[...].astype(jnp.bfloat16)
        y = jnp.dot(x, w[:, lo:lo + d_model],
                    preferred_element_type=jnp.float32) + b[:, lo:lo + d_model]
        return y.astype(jnp.bfloat16)

    q = proj(xq_ref, 0)
    k = proj(xk_ref, d_model)
    v = proj(xv_ref, 2 * d_model)

    bias = _mask_bias(mask_ref) if mask_ref is not None else None
    _attend_and_project(q, k, v, bias, w_o_ref, b_o_ref, o_ref, ctx_ref, h=h, d_k=d_k)


# ----------------------------------------------------------------------------
# pallas_call wrappers
# ----------------------------------------------------------------------------
def _weight_specs(d_model):
    return [
        pl.BlockSpec((d_model, 3 * d_model), lambda b: (0, 0)),   # W_qkv resident
        pl.BlockSpec((1, 3 * d_model), lambda b: (0, 0)),         # b_qkv resident
        pl.BlockSpec((d_model, d_model), lambda b: (0, 0)),       # W_o resident
        pl.BlockSpec((1, d_model), lambda b: (0, 0)),             # b_o resident
    ]


def _fused_mha_self(x, w_qkv, b_qkv, w_o, b_o, mask_i8, *, h):
    B, S, d_model = x.shape
    d_k = d_model // h
    has_mask = mask_i8 is not None
    kernel = functools.partial(_self_mha_kernel, h=h, d_k=d_k, has_mask=has_mask)

    bsd_spec = pl.BlockSpec((None, S, d_model), lambda b: (b, 0, 0))
    in_specs = [bsd_spec] + _weight_specs(d_model)
    inputs = [x, w_qkv, b_qkv, w_o, b_o]
    if has_mask:
        in_specs.append(pl.BlockSpec((None, S, S), lambda b: (b, 0, 0)))
        inputs.append(mask_i8)

    return pl.pallas_call(
        kernel,
        out_shape=jax.ShapeDtypeStruct((B, S, d_model), jnp.float32),
        grid=(B,),
        in_specs=in_specs,
        out_specs=bsd_spec,
        scratch_shapes=[pltpu.VMEM((S, d_model), jnp.float32)],
        compiler_params=pltpu.CompilerParams(
            dimension_semantics=("parallel",),
            vmem_limit_bytes=_VMEM_LIMIT,
        ),
    )(*inputs)


def _fused_mha_cross(xq, xk, xv, w_qkv, b_qkv, w_o, b_o, mask_i8, *, h):
    B, S, d_model = xq.shape
    assert xk.shape == xq.shape and xv.shape == xq.shape
    d_k = d_model // h
    has_mask = mask_i8 is not None
    kernel = functools.partial(_cross_mha_kernel, h=h, d_k=d_k, has_mask=has_mask)

    bsd_spec = pl.BlockSpec((None, S, d_model), lambda b: (b, 0, 0))
    in_specs = [bsd_spec, bsd_spec, bsd_spec] + _weight_specs(d_model)
    inputs = [xq, xk, xv, w_qkv, b_qkv, w_o, b_o]
    if has_mask:
        in_specs.append(pl.BlockSpec((None, S, S), lambda b: (b, 0, 0)))
        inputs.append(mask_i8)

    return pl.pallas_call(
        kernel,
        out_shape=jax.ShapeDtypeStruct((B, S, d_model), jnp.float32),
        grid=(B,),
        in_specs=in_specs,
        out_specs=bsd_spec,
        scratch_shapes=[pltpu.VMEM((S, d_model), jnp.float32)],
        compiler_params=pltpu.CompilerParams(
            dimension_semantics=("parallel",),
            vmem_limit_bytes=_VMEM_LIMIT,
        ),
    )(*inputs)


# ----------------------------------------------------------------------------
# Parameter preparation (hoisted out of the forward): fold 1/sqrt(d_k) into
# the Q projection, concatenate QKV weights, cast to bf16 ONCE.
# ----------------------------------------------------------------------------
def prepare_params(params, h):
    d_model = params["wq"].shape[0]
    assert d_model % h == 0
    d_k = d_model // h
    scale = 1.0 / math.sqrt(d_k)
    w_qkv = jnp.concatenate(
        [params["wq"] * scale, params["wk"], params["wv"]], axis=1).astype(jnp.bfloat16)
    b_qkv = jnp.concatenate(
        [params["bq"] * scale, params["bk"], params["bv"]], axis=0
    ).astype(jnp.float32).reshape(1, 3 * d_model)
    return {
        "w_qkv": w_qkv,
        "b_qkv": b_qkv,
        "w_o": params["wo"].astype(jnp.bfloat16),
        "b_o": params["bo"].astype(jnp.float32).reshape(1, d_model),
        "h": h,
        "d_model": d_model,
    }


def multi_headed_attention(prep, query, key, value, mask=None):
    """query/key/value: (B, S, d_model) f32; mask: None, (B,S,S) or (B,1,S,S)."""
    h = prep["h"]
    mask_i8 = None
    if mask is not None:
        if mask.ndim == 4:           # (B, 1, S, S) broadcast-over-heads form
            mask = mask[:, 0]
        mask_i8 = mask.astype(jnp.int8)     # 4x less HBM traffic than int32
    if (query is key) and (key is value):
        return _fused_mha_self(query, prep["w_qkv"], prep["b_qkv"],
                               prep["w_o"], prep["b_o"], mask_i8, h=h)
    return _fused_mha_cross(query, key, value, prep["w_qkv"], prep["b_qkv"],
                            prep["w_o"], prep["b_o"], mask_i8, h=h)


# ----------------------------------------------------------------------------
# Pure-JAX reference mirroring the kernel numerics
# (bf16 MXU operands, f32 accumulation, f32 softmax, same folded weights).
# ----------------------------------------------------------------------------
def reference(prep, query, key, value, mask):
    h, d_model = prep["h"], prep["d_model"]
    d_k = d_model // h
    B, S, _ = query.shape
    bf16 = jnp.bfloat16
    w, b = prep["w_qkv"], prep["b_qkv"][0]

    def proj(x, lo):
        y = jnp.dot(x.reshape(B * S, d_model).astype(bf16), w[:, lo:lo + d_model],
                    preferred_element_type=jnp.float32) + b[lo:lo + d_model]
        return y.astype(bf16).reshape(B, S, h, d_k)

    q = proj(query, 0)
    k = proj(key, d_model)
    v = proj(value, 2 * d_model)

    s = jnp.einsum("bqhd,bkhd->bhqk", q, k, preferred_element_type=jnp.float32)
    if mask is not None:
        if mask.ndim == 3:
            mask = mask[:, None]
        s = s + jnp.where(mask == 0, jnp.float32(-1000000000.0), jnp.float32(0.0))
    p = jax.nn.softmax(s, axis=-1)
    ctx = jnp.einsum("bhqk,bkhd->bqhd", p.astype(bf16), v,
                     preferred_element_type=jnp.float32)
    ctx = ctx.reshape(B * S, d_model).astype(bf16)
    out = jnp.dot(ctx, prep["w_o"], preferred_element_type=jnp.float32) + prep["b_o"][0]
    return out.reshape(B, S, d_model)


if __name__ == "__main__":
    B, S, h, d_model = 2, 8, 4, 32

    key0 = jax.random.PRNGKey(0)
    ks = jax.random.split(key0, 12)
    pscale = 1.0 / math.sqrt(d_model)

    # Deterministic parameter init (weights stored (in, out) = torch W^T).
    params = {
        "wq": jax.random.uniform(ks[0], (d_model, d_model), jnp.float32, -pscale, pscale),
        "bq": jax.random.uniform(ks[1], (d_model,), jnp.float32, -pscale, pscale),
        "wk": jax.random.uniform(ks[2], (d_model, d_model), jnp.float32, -pscale, pscale),
        "bk": jax.random.uniform(ks[3], (d_model,), jnp.float32, -pscale, pscale),
        "wv": jax.random.uniform(ks[4], (d_model, d_model), jnp.float32, -pscale, pscale),
        "bv": jax.random.uniform(ks[5], (d_model,), jnp.float32, -pscale, pscale),
        "wo": jax.random.uniform(ks[6], (d_model, d_model), jnp.float32, -pscale, pscale),
        "bo": jax.random.uniform(ks[7], (d_model,), jnp.float32, -pscale, pscale),
    }
    prep = prepare_params(params, h)

    # --- case 1: self-attention (fused single-pass) with a causal mask -------
    x_self = jax.random.normal(ks[8], (B, S, d_model), jnp.float32)
    mask = jnp.tril(jnp.ones((S, S), jnp.int32))[None].repeat(B, axis=0)

    out1 = multi_headed_attention(prep, x_self, x_self, x_self, mask)
    out1 = jax.block_until_ready(out1)
    ref1 = reference(prep, x_self, x_self, x_self, mask)
    np.testing.assert_allclose(np.asarray(out1), np.asarray(ref1),
                               rtol=1e-2, atol=1e-2)

    # --- case 2: distinct q/k/v (fused cross path), no mask ------------------
    q_in = jax.random.normal(ks[9], (B, S, d_model), jnp.float32)
    k_in = jax.random.normal(ks[10], (B, S, d_model), jnp.float32)
    v_in = jax.random.normal(ks[11], (B, S, d_model), jnp.float32)

    out2 = multi_headed_attention(prep, q_in, k_in, v_in, None)
    out2 = jax.block_until_ready(out2)
    ref2 = reference(prep, q_in, k_in, v_in, None)
    np.testing.assert_allclose(np.asarray(out2), np.asarray(ref2),
                               rtol=1e-2, atol=1e-2)

    print("KERNEL_OK")
</pallas_src>

<mosaic_0001>
module attributes {stable_mosaic.version = 11 : i64} {
  func.func @_self_mha_kernel(%arg0: i32, %arg1: memref<1x8x32xf32, #tpu.memory_space<vmem>>, %arg2: memref<32x96xbf16, #tpu.memory_space<vmem>>, %arg3: memref<1x96xf32, #tpu.memory_space<vmem>>, %arg4: memref<32x32xbf16, #tpu.memory_space<vmem>>, %arg5: memref<1x32xf32, #tpu.memory_space<vmem>>, %arg6: memref<1x8x8xi8, #tpu.memory_space<vmem>>, %arg7: memref<1x8x32xf32, #tpu.memory_space<vmem>>, %arg8: memref<8x32xf32, #tpu.memory_space<vmem>>) attributes {dimension_semantics = [#tpu.dimension_semantics<parallel>], iteration_bounds = array<i64: 2>, scalar_prefetch = 0 : i64, scratch_operands = 1 : i64, tpu.core_type = #tpu.core_type<tc>, window_params = [{transform_indices = @transform_0, window_bounds = array<i64: 1, 8, 32>}, {pipeline_mode = #tpu.pipeline_mode<synchronous>, transform_indices = @transform_1, window_bounds = array<i64: 32, 96>}, {pipeline_mode = #tpu.pipeline_mode<synchronous>, transform_indices = @transform_2, window_bounds = array<i64: 1, 96>}, {pipeline_mode = #tpu.pipeline_mode<synchronous>, transform_indices = @transform_3, window_bounds = array<i64: 32, 32>}, {pipeline_mode = #tpu.pipeline_mode<synchronous>, transform_indices = @transform_4, window_bounds = array<i64: 1, 32>}, {transform_indices = @transform_5, window_bounds = array<i64: 1, 8, 8>}, {transform_indices = @transform_6, window_bounds = array<i64: 1, 8, 32>}]} {
    %c0 = arith.constant 0 : index
    %c0_0 = arith.constant 0 : index
    %c0_1 = arith.constant 0 : index
    %0 = vector.load %arg1[%c0, %c0_0, %c0_1] : memref<1x8x32xf32, #tpu.memory_space<vmem>>, vector<1x8x32xf32>
    %1 = vector.shape_cast %0 : vector<1x8x32xf32> to vector<8x32xf32>
    %2 = arith.truncf %1 : vector<8x32xf32> to vector<8x32xbf16>
    %c0_2 = arith.constant 0 : index
    %c0_3 = arith.constant 0 : index
    %3 = vector.load %arg2[%c0_2, %c0_3] : memref<32x96xbf16, #tpu.memory_space<vmem>>, vector<32x96xbf16>
    %cst = arith.constant dense<0.000000e+00> : vector<8x96xf32>
    %4 = tpu.matmul %2, %3, %cst {dimension_numbers = #tpu.dot_dimension_numbers<[1], [0], [0], [1], [0, 0, 1, 1], [], []>} : vector<8x32xbf16>, vector<32x96xbf16>, vector<8x96xf32> -> vector<8x96xf32>
    %c0_4 = arith.constant 0 : index
    %c0_5 = arith.constant 0 : index
    %5 = vector.load %arg3[%c0_4, %c0_5] : memref<1x96xf32, #tpu.memory_space<vmem>>, vector<1x96xf32>
    %6 = vector.broadcast %5 : vector<1x96xf32> to vector<8x96xf32>
    %7 = arith.addf %4, %6 : vector<8x96xf32>
    %8 = vector.extract_strided_slice %7 {offsets = [0, 0], sizes = [8, 32], strides = [1, 1]} : vector<8x96xf32> to vector<8x32xf32>
    %9 = arith.truncf %8 : vector<8x32xf32> to vector<8x32xbf16>
    %10 = vector.extract_strided_slice %7 {offsets = [0, 32], sizes = [8, 32], strides = [1, 1]} : vector<8x96xf32> to vector<8x32xf32>
    %11 = arith.truncf %10 : vector<8x32xf32> to vector<8x32xbf16>
    %12 = vector.extract_strided_slice %7 {offsets = [0, 64], sizes = [8, 32], strides = [1, 1]} : vector<8x96xf32> to vector<8x32xf32>
    %13 = arith.truncf %12 : vector<8x32xf32> to vector<8x32xbf16>
    %c0_6 = arith.constant 0 : index
    %c0_7 = arith.constant 0 : index
    %c0_8 = arith.constant 0 : index
    %14 = vector.load %arg6[%c0_6, %c0_7, %c0_8] : memref<1x8x8xi8, #tpu.memory_space<vmem>>, vector<1x8x8xi8>
    %15 = vector.shape_cast %14 : vector<1x8x8xi8> to vector<8x8xi8>
    %16 = arith.extsi %15 : vector<8x8xi8> to vector<8x8xi32>
    %c0_i32 = arith.constant 0 : i32
    %17 = vector.broadcast %c0_i32 : i32 to vector<8x8xi32>
    %18 = arith.cmpi eq, %16, %17 : vector<8x8xi32>
    %cst_9 = arith.constant -1.000000e+09 : f32
    %cst_10 = arith.constant 0.000000e+00 : f32
    %19 = vector.broadcast %cst_9 : f32 to vector<8x8xf32>
    %20 = vector.broadcast %cst_10 : f32 to vector<8x8xf32>
    %21 = arith.select %18, %19, %20 : vector<8x8xi1>, vector<8x8xf32>
    %22 = vector.extract_strided_slice %9 {offsets = [0, 0], sizes = [8, 8], strides = [1, 1]} : vector<8x32xbf16> to vector<8x8xbf16>
    %23 = vector.extract_strided_slice %11 {offsets = [0, 0], sizes = [8, 8], strides = [1, 1]} : vector<8x32xbf16> to vector<8x8xbf16>
    %cst_11 = arith.constant dense<0.000000e+00> : vector<8x8xf32>
    %24 = tpu.matmul %22, %23, %cst_11 {dimension_numbers = #tpu.dot_dimension_numbers<[1], [1], [0], [0], [0, 0, 1, 0], [], []>} : vector<8x8xbf16>, vector<8x8xbf16>, vector<8x8xf32> -> vector<8x8xf32>
    %25 = arith.addf %24, %21 : vector<8x8xf32>
    %cst_12 = arith.constant dense<0xFF800000> : vector<8xf32>
    %26 = vector.multi_reduction <maximumf>, %25, %cst_12 [1] : vector<8x8xf32> to vector<8xf32>
    %27 = vector.shape_cast %26 : vector<8xf32> to vector<8x1xf32>
    %28 = vector.broadcast %27 : vector<8x1xf32> to vector<8x8xf32>
    %29 = arith.subf %25, %28 : vector<8x8xf32>
    %30 = math.exp %29 : vector<8x8xf32>
    %cst_13 = arith.constant dense<0.000000e+00> : vector<8xf32>
    %31 = vector.multi_reduction <add>, %30, %cst_13 [1] : vector<8x8xf32> to vector<8xf32>
    %32 = vector.shape_cast %31 : vector<8xf32> to vector<8x1xf32>
    %33 = arith.truncf %30 : vector<8x8xf32> to vector<8x8xbf16>
    %34 = vector.extract_strided_slice %13 {offsets = [0, 0], sizes = [8, 8], strides = [1, 1]} : vector<8x32xbf16> to vector<8x8xbf16>
    %cst_14 = arith.constant dense<0.000000e+00> : vector<8x8xf32>
    %35 = tpu.matmul %33, %34, %cst_14 {dimension_numbers = #tpu.dot_dimension_numbers<[1], [0], [0], [1], [0, 0, 1, 1], [], []>} : vector<8x8xbf16>, vector<8x8xbf16>, vector<8x8xf32> -> vector<8x8xf32>
    %36 = tpu.reciprocal %32 {approx = true} : vector<8x1xf32> -> vector<8x1xf32>
    %37 = vector.broadcast %36 : vector<8x1xf32> to vector<8x8xf32>
    %38 = arith.mulf %35, %37 : vector<8x8xf32>
    %c0_15 = arith.constant 0 : index
    %c0_16 = arith.constant 0 : index
    %39 = vector.load %arg8[%c0_15, %c0_16] : memref<8x32xf32, #tpu.memory_space<vmem>>, vector<8x8xf32>
    tpu.vector_store %arg8[%c0_15, %c0_16], %38 {strides = array<i32>} : memref<8x32xf32, #tpu.memory_space<vmem>>, vector<8x8xf32>,
    %40 = vector.extract_strided_slice %9 {offsets = [0, 8], sizes = [8, 8], strides = [1, 1]} : vector<8x32xbf16> to vector<8x8xbf16>
    %41 = vector.extract_strided_slice %11 {offsets = [0, 8], sizes = [8, 8], strides = [1, 1]} : vector<8x32xbf16> to vector<8x8xbf16>
    %cst_17 = arith.constant dense<0.000000e+00> : vector<8x8xf32>
    %42 = tpu.matmul %40, %41, %cst_17 {dimension_numbers = #tpu.dot_dimension_numbers<[1], [1], [0], [0], [0, 0, 1, 0], [], []>} : vector<8x8xbf16>, vector<8x8xbf16>, vector<8x8xf32> -> vector<8x8xf32>
    %43 = arith.addf %42, %21 : vector<8x8xf32>
    %cst_18 = arith.constant dense<0xFF800000> : vector<8xf32>
    %44 = vector.multi_reduction <maximumf>, %43, %cst_18 [1] : vector<8x8xf32> to vector<8xf32>
    %45 = vector.shape_cast %44 : vector<8xf32> to vector<8x1xf32>
    %46 = vector.broadcast %45 : vector<8x1xf32> to vector<8x8xf32>
    %47 = arith.subf %43, %46 : vector<8x8xf32>
    %48 = math.exp %47 : vector<8x8xf32>
    %cst_19 = arith.constant dense<0.000000e+00> : vector<8xf32>
    %49 = vector.multi_reduction <add>, %48, %cst_19 [1] : vector<8x8xf32> to vector<8xf32>
    %50 = vector.shape_cast %49 : vector<8xf32> to vector<8x1xf32>
    %51 = arith.truncf %48 : vector<8x8xf32> to vector<8x8xbf16>
    %52 = vector.extract_strided_slice %13 {offsets = [0, 8], sizes = [8, 8], strides = [1, 1]} : vector<8x32xbf16> to vector<8x8xbf16>
    %cst_20 = arith.constant dense<0.000000e+00> : vector<8x8xf32>
    %53 = tpu.matmul %51, %52, %cst_20 {dimension_numbers = #tpu.dot_dimension_numbers<[1], [0], [0], [1], [0, 0, 1, 1], [], []>} : vector<8x8xbf16>, vector<8x8xbf16>, vector<8x8xf32> -> vector<8x8xf32>
    %54 = tpu.reciprocal %50 {approx = true} : vector<8x1xf32> -> vector<8x1xf32>
    %55 = vector.broadcast %54 : vector<8x1xf32> to vector<8x8xf32>
    %56 = arith.mulf %53, %55 : vector<8x8xf32>
    %c0_21 = arith.constant 0 : index
    %c8 = arith.constant 8 : index
    %57 = vector.load %arg8[%c0_21, %c8] : memref<8x32xf32, #tpu.memory_space<vmem>>, vector<8x8xf32>
    tpu.vector_store %arg8[%c0_21, %c8], %56 {strides = array<i32>} : memref<8x32xf32, #tpu.memory_space<vmem>>, vector<8x8xf32>,
    %58 = vector.extract_strided_slice %9 {offsets = [0, 16], sizes = [8, 8], strides = [1, 1]} : vector<8x32xbf16> to vector<8x8xbf16>
    %59 = vector.extract_strided_slice %11 {offsets = [0, 16], sizes = [8, 8], strides = [1, 1]} : vector<8x32xbf16> to vector<8x8xbf16>
    %cst_22 = arith.constant dense<0.000000e+00> : vector<8x8xf32>
    %60 = tpu.matmul %58, %59, %cst_22 {dimension_numbers = #tpu.dot_dimension_numbers<[1], [1], [0], [0], [0, 0, 1, 0], [], []>} : vector<8x8xbf16>, vector<8x8xbf16>, vector<8x8xf32> -> vector<8x8xf32>
    %61 = arith.addf %60, %21 : vector<8x8xf32>
    %cst_23 = arith.constant dense<0xFF800000> : vector<8xf32>
    %62 = vector.multi_reduction <maximumf>, %61, %cst_23 [1] : vector<8x8xf32> to vector<8xf32>
    %63 = vector.shape_cast %62 : vector<8xf32> to vector<8x1xf32>
    %64 = vector.broadcast %63 : vector<8x1xf32> to vector<8x8xf32>
    %65 = arith.subf %61, %64 : vector<8x8xf32>
    %66 = math.exp %65 : vector<8x8xf32>
    %cst_24 = arith.constant dense<0.000000e+00> : vector<8xf32>
    %67 = vector.multi_reduction <add>, %66, %cst_24 [1] : vector<8x8xf32> to vector<8xf32>
    %68 = vector.shape_cast %67 : vector<8xf32> to vector<8x1xf32>
    %69 = arith.truncf %66 : vector<8x8xf32> to vector<8x8xbf16>
    %70 = vector.extract_strided_slice %13 {offsets = [0, 16], sizes = [8, 8], strides = [1, 1]} : vector<8x32xbf16> to vector<8x8xbf16>
    %cst_25 = arith.constant dense<0.000000e+00> : vector<8x8xf32>
    %71 = tpu.matmul %69, %70, %cst_25 {dimension_numbers = #tpu.dot_dimension_numbers<[1], [0], [0], [1], [0, 0, 1, 1], [], []>} : vector<8x8xbf16>, vector<8x8xbf16>, vector<8x8xf32> -> vector<8x8xf32>
    %72 = tpu.reciprocal %68 {approx = true} : vector<8x1xf32> -> vector<8x1xf32>
    %73 = vector.broadcast %72 : vector<8x1xf32> to vector<8x8xf32>
    %74 = arith.mulf %71, %73 : vector<8x8xf32>
    %c0_26 = arith.constant 0 : index
    %c16 = arith.constant 16 : index
    %75 = vector.load %arg8[%c0_26, %c16] : memref<8x32xf32, #tpu.memory_space<vmem>>, vector<8x8xf32>
    tpu.vector_store %arg8[%c0_26, %c16], %74 {strides = array<i32>} : memref<8x32xf32, #tpu.memory_space<vmem>>, vector<8x8xf32>,
    %76 = vector.extract_strided_slice %9 {offsets = [0, 24], sizes = [8, 8], strides = [1, 1]} : vector<8x32xbf16> to vector<8x8xbf16>
    %77 = vector.extract_strided_slice %11 {offsets = [0, 24], sizes = [8, 8], strides = [1, 1]} : vector<8x32xbf16> to vector<8x8xbf16>
    %cst_27 = arith.constant dense<0.000000e+00> : vector<8x8xf32>
    %78 = tpu.matmul %76, %77, %cst_27 {dimension_numbers = #tpu.dot_dimension_numbers<[1], [1], [0], [0], [0, 0, 1, 0], [], []>} : vector<8x8xbf16>, vector<8x8xbf16>, vector<8x8xf32> -> vector<8x8xf32>
    %79 = arith.addf %78, %21 : vector<8x8xf32>
    %cst_28 = arith.constant dense<0xFF800000> : vector<8xf32>
    %80 = vector.multi_reduction <maximumf>, %79, %cst_28 [1] : vector<8x8xf32> to vector<8xf32>
    %81 = vector.shape_cast %80 : vector<8xf32> to vector<8x1xf32>
    %82 = vector.broadcast %81 : vector<8x1xf32> to vector<8x8xf32>
    %83 = arith.subf %79, %82 : vector<8x8xf32>
    %84 = math.exp %83 : vector<8x8xf32>
    %cst_29 = arith.constant dense<0.000000e+00> : vector<8xf32>
    %85 = vector.multi_reduction <add>, %84, %cst_29 [1] : vector<8x8xf32> to vector<8xf32>
    %86 = vector.shape_cast %85 : vector<8xf32> to vector<8x1xf32>
    %87 = arith.truncf %84 : vector<8x8xf32> to vector<8x8xbf16>
    %88 = vector.extract_strided_slice %13 {offsets = [0, 24], sizes = [8, 8], strides = [1, 1]} : vector<8x32xbf16> to vector<8x8xbf16>
    %cst_30 = arith.constant dense<0.000000e+00> : vector<8x8xf32>
    %89 = tpu.matmul %87, %88, %cst_30 {dimension_numbers = #tpu.dot_dimension_numbers<[1], [0], [0], [1], [0, 0, 1, 1], [], []>} : vector<8x8xbf16>, vector<8x8xbf16>, vector<8x8xf32> -> vector<8x8xf32>
    %90 = tpu.reciprocal %86 {approx = true} : vector<8x1xf32> -> vector<8x1xf32>
    %91 = vector.broadcast %90 : vector<8x1xf32> to vector<8x8xf32>
    %92 = arith.mulf %89, %91 : vector<8x8xf32>
    %c0_31 = arith.constant 0 : index
    %c24 = arith.constant 24 : index
    %93 = vector.load %arg8[%c0_31, %c24] : memref<8x32xf32, #tpu.memory_space<vmem>>, vector<8x8xf32>
    tpu.vector_store %arg8[%c0_31, %c24], %92 {strides = array<i32>} : memref<8x32xf32, #tpu.memory_space<vmem>>, vector<8x8xf32>,
    %c0_32 = arith.constant 0 : index
    %c0_33 = arith.constant 0 : index
    %94 = vector.load %arg8[%c0_32, %c0_33] : memref<8x32xf32, #tpu.memory_space<vmem>>, vector<8x32xf32>
    %95 = arith.truncf %94 : vector<8x32xf32> to vector<8x32xbf16>
    %c0_34 = arith.constant 0 : index
    %c0_35 = arith.constant 0 : index
    %96 = vector.load %arg4[%c0_34, %c0_35] : memref<32x32xbf16, #tpu.memory_space<vmem>>, vector<32x32xbf16>
    %cst_36 = arith.constant dense<0.000000e+00> : vector<8x32xf32>
    %97 = tpu.matmul %95, %96, %cst_36 {dimension_numbers = #tpu.dot_dimension_numbers<[1], [0], [0], [1], [0, 0, 1, 1], [], []>} : vector<8x32xbf16>, vector<32x32xbf16>, vector<8x32xf32> -> vector<8x32xf32>
    %c0_37 = arith.constant 0 : index
    %c0_38 = arith.constant 0 : index
    %98 = vector.load %arg5[%c0_37, %c0_38] : memref<1x32xf32, #tpu.memory_space<vmem>>, vector<1x32xf32>
    %99 = vector.broadcast %98 : vector<1x32xf32> to vector<8x32xf32>
    %100 = arith.addf %97, %99 : vector<8x32xf32>
    %c0_39 = arith.constant 0 : index
    %c0_40 = arith.constant 0 : index
    %c0_41 = arith.constant 0 : index
    %101 = vector.load %arg7[%c0_39, %c0_40, %c0_41] : memref<1x8x32xf32, #tpu.memory_space<vmem>>, vector<1x8x32xf32>
    %102 = vector.shape_cast %101 : vector<1x8x32xf32> to vector<8x32xf32>
    %103 = vector.shape_cast %100 : vector<8x32xf32> to vector<1x8x32xf32>
    tpu.vector_store %arg7[%c0_39, %c0_40, %c0_41], %103 {strides = array<i32>} : memref<1x8x32xf32, #tpu.memory_space<vmem>>, vector<1x8x32xf32>,
    return
  }
  func.func @transform_0(%arg0: i32) -> (i32, i32, i32) {
    %c0_i32 = arith.constant 0 : i32
    %c0_i32_0 = arith.constant 0 : i32
    %c0_i32_1 = arith.constant 0 : i32
    return %arg0, %c0_i32, %c0_i32_0 : i32, i32, i32
  }
  func.func @transform_1(%arg0: i32) -> (i32, i32) {
    %c0_i32 = arith.constant 0 : i32
    %c0_i32_0 = arith.constant 0 : i32
    %c0_i32_1 = arith.constant 0 : i32
    return %c0_i32, %c0_i32_0 : i32, i32
  }
  func.func @transform_2(%arg0: i32) -> (i32, i32) {
    %c0_i32 = arith.constant 0 : i32
    %c0_i32_0 = arith.constant 0 : i32
    %c0_i32_1 = arith.constant 0 : i32
    return %c0_i32, %c0_i32_0 : i32, i32
  }
  func.func @transform_3(%arg0: i32) -> (i32, i32) {
    %c0_i32 = arith.constant 0 : i32
    %c0_i32_0 = arith.constant 0 : i32
    %c0_i32_1 = arith.constant 0 : i32
    return %c0_i32, %c0_i32_0 : i32, i32
  }
  func.func @transform_4(%arg0: i32) -> (i32, i32) {
    %c0_i32 = arith.constant 0 : i32
    %c0_i32_0 = arith.constant 0 : i32
    %c0_i32_1 = arith.constant 0 : i32
    return %c0_i32, %c0_i32_0 : i32, i32
  }
  func.func @transform_5(%arg0: i32) -> (i32, i32, i32) {
    %c0_i32 = arith.constant 0 : i32
    %c0_i32_0 = arith.constant 0 : i32
    %c0_i32_1 = arith.constant 0 : i32
    return %arg0, %c0_i32, %c0_i32_0 : i32, i32, i32
  }
  func.func @transform_6(%arg0: i32) -> (i32, i32, i32) {
    %c0_i32 = arith.constant 0 : i32
    %c0_i32_0 = arith.constant 0 : i32
    %c0_i32_1 = arith.constant 0 : i32
    return %arg0, %c0_i32, %c0_i32_0 : i32, i32, i32
  }
}

</mosaic_0001>

<bundles_post_ra>
// kernel: tpu_custom_call.1
= control target key start
LH: loop header
LB: loop body
LE: loop exit
PB: predicated region body
PF: predicated region fallthrough
CT: control target
= control target key end

     0   :  { %s1730_s0 = inlined_call_operand.hbm [shape: f32[2,8,32], index: 0, kind: input, shape index: {}]   ;;  %s1731_s1 = inlined_call_operand.hbm [shape: bf16[32,96], index: 1, kind: input, shape index: {}]   ;;  %s1732_s2 = inlined_call_operand.vmem [shape: f32[1,96], index: 2, kind: input, shape index: {}]   ;;  %s1733_s3 = inlined_call_operand.hbm [shape: bf16[32,32], index: 3, kind: input, shape index: {}]   ;;  %s1734_s4 = inlined_call_operand.vmem [shape: f32[1,32], index: 4, kind: input, shape index: {}]   ;;  %s1735_s5 = inlined_call_operand.vmem [shape: s8[2,8,8], index: 5, kind: input, shape index: {}]   ;;  %s1736_s6 = inlined_call_operand.hbm [shape: f32[2,8,32], index: 6, kind: output, shape index: {}]  }
   0x1   :  { %1741 = sst [smem:[#allocation13_spill]] %s1731_s1 }
   0x2   :  { %11 = vsyncpa [#allocation4], 0 }
   0x3   :  { %13 = vsyncpa [#allocation4 + $0x1], 0 }
   0x4   :  { %14 = vsyncpa [#allocation7], 0 }
   0x5   :  { %15 = vsyncpa [#allocation5], 0 }
   0x6   :  { %17 = vsyncpa [#allocation5 + $0x1], 0  ;;  %s1463_s21 = smov 0   ;;  %s1465_s22 = smov 0  }
   0x7   :  { %s1467_s23 = smov 0   ;;  %s1469_s24 = smov 0  }
   0x8 LB: > { %s1484_s25 = sadd.s32 4294967295, %s1404_s24   ;;  %s1032_s26 = sadd.s32 4294967294, %s1404_s24   ;;  %s1404_s24 = sphi %s1469_s24, %s1760_s24   ;;  %s1400_s23 = sphi %s1467_s23, %s1759_s23   ;;  %s1396_s22 = sphi %s1465_s22, %s1758_s22   ;;  %s1392_s21 = sphi %s1463_s21, %s1757_s21  }
   0x9   : > { %p43_p0 = scmp.ne.s32.totalorder %s1396_s22, %s1392_s21  ;;  %p1737_p1 = scmp.eq.s32.totalorder %s1484_s25, 0 }
   0xa   : > { %p183_p3 = scmp.eq.s32.totalorder %s1032_s26, 1  ;;  %p1033_p5 = scmp.ge.s32.totalorder %s1404_s24, 1 }
   0xb   : > { %p1493_p4 = por %p1737_p1, %p43_p0  ;;  %p190_p7 = scmp.lt.s32.totalorder %s1404_s24, 3 }
   0xc   : > { %p1498_p6 = por %p183_p3, %p43_p0  ;;  %s1406_s30 = smov [#allocation6]  }
   0xd   : > { %s1742_s27 = scalar_select %p1493_p4, 1, 0 }
   0xe   : > { %s1743_s28 = scalar_select %p1498_p6, 1, 0 }
   0xf   : > { %p1503_p8 = pnand %p1033_p5, %p190_p7  ;;  %s202_s7 = sshll.u32 %s1406_s30, 4  ;;  %s203_s7 = int_to_ptr.vmem [resolvable:$true] %s202_s7 }
  0x10   : > { %s1407_s9 = smov [#allocation8]   ;;  %s1267_s11 = scalar_lea.vmem %s203_s7, 256 }
  0x11   : > { %s1744_s29 = scalar_select %p1503_p8, 1, 0 }
  0x12   : > { %p1163_p9 = pneg %p1503_p8  ;;  %s218_s10 = sshll.u32 %s1407_s9, 4  ;;  %s219_s10 = int_to_ptr.vmem [resolvable:$true] %s218_s10 }
  0x13   : > { %p1268_p13 = scmp.ne.s32.totalorder %s203_s7, %s1267_s11  ;;  %p1275_p5 = scmp.lt.s32.totalorder %s203_s7, %s203_s7 }
  0x14   : > { %p1512_p11 = pnand %p1163_p9, %p1737_p1  ;;  %p1276_p7 = scmp.lt.s32.totalorder %s1267_s11, %s1267_s11 }
  0x16   : > { %p1258_p12 = pneg %p1512_p11  ;;  %p1277_p10 = por %p1276_p7, %p1275_p5 }
  0x18   : > { %p1270_p0 = pnand %p1268_p13, %p1258_p12 }
  0x1a   : > { %p1271_p3 = pneg %p1270_p0 }
  0x1c   : > { %p1278_p9 = pnand %p1277_p10, %p1271_p3 }
  0x1e   : > { %1281 = shalt.err (!%p1278_p9)
}
  0x1f   : > { %s1408_s12 = smov 64   ;;  %s1409_s13 = smov 4  }
  0x20   : > { %s1746_s1 = sld [smem:[#allocation13_spill]]  ;;  %s1293_s16 = scalar_lea.vmem %s219_s10, 256 }
  0x21   : > { %p1294_p1 = scmp.ne.s32.totalorder %s219_s10, %s1293_s16  ;;  %p1301_p2 = scmp.lt.s32.totalorder %s219_s10, %s219_s10 }
  0x22   : > { %p1302_p6 = scmp.lt.s32.totalorder %s1293_s16, %s1293_s16 }
  0x23   : > { %p1296_p13 = pnand %p1294_p1, %p1258_p12 }
  0x24   : > { %p1303_p5 = por %p1302_p6, %p1301_p2 }
  0x25   : > { %p1297_p0 = pneg %p1296_p13 }
  0x26   : > { %1166 = dma.hbm_to_vmem [thread:$0]  (!%p1512_p11), %s1746_s1, 256, %s203_s7, [#allocation7], %s1408_s12, %s1408_s12, %s1409_s13  }
  0x27   : > { %p1304_p10 = pnand %p1303_p5, %p1297_p0 }
  0x29   : > { %1307 = shalt.err (!%p1304_p10)
}
  0x2a   : > { %1169 = dma.hbm_to_vmem [thread:$0]  (!%p1512_p11), %s1733_s3, 256, %s219_s10, [#allocation7], %s1408_s12, %s1408_s12, %s1409_s13  }
  0x2b   : > { %s1535_s19 = sadd.s32 1, %s1404_s24   ;;  %s30_s20 = sadd.s32 1, %s1400_s23 }
  0x2c   : > { %s27_s26 = ssub.s32 %s1404_s24, %s1535_s19  ;;  %p37_p1 = scmp.ne.s32.totalorder %s1400_s23, %s1396_s22 }
  0x2d   : > { %p28_p2 = scmp.eq.s32.totalorder %s27_s26, 0  ;;  %p38_p6 = scmp.eq.s32.totalorder %s1404_s24, 0 }
  0x2e   : > { %p1747_p12 = scmp.eq.s32.totalorder %s1484_s25, 1  ;;  %p1180_p7 = scmp.lt.s32.totalorder %s1404_s24, 2 }
  0x2f   : > { %s1551_s7 = scalar_select %p28_p2, %s1400_s23, %s30_s20  }
  0x30   : > { %p1545_p3 = por %p1747_p12, %p37_p1  ;;  %p39_p9 = por %p38_p6, %p37_p1 }
  0x31   : > { %s235_s8 = sand.u32 1, %s1400_s23   ;;  %s1038_s10 = sshll.u32 %s1404_s24, 7 }
  0x32   : > { %s1748_s30 = scalar_select %p1545_p3, 1, 0 }
  0x33   : > { %s1037_s9 = sshll.u32 %s235_s8, 3  ;;  %s1558_s13 = scalar_lea.hbm %s1730_s0, %s1038_s10 }
  0x34   : > { %s239_s14 = scalar_lea.vmem [#allocation3], %s1037_s9  ;;  %p1560_p11 = pnand %p1180_p7, %p39_p9 }
  0x35   : > { %s246_s15 = sshll.u32 %s239_s14, 4  ;;  %s236_s17 = scalar_lea.sflag [#allocation4], %s235_s8  ;;  %s247_s15 = int_to_ptr.vmem [resolvable:$true] %s246_s15 }
  0x36   : > { %s1308_s18 = scalar_lea.hbm %s1558_s13, 128  ;;  %p1310_p0 = pneg %p1560_p11 }
  0x37   : > { %p1309_p13 = scmp.ne.s32.totalorder %s1558_s13, %s1308_s18  ;;  %s1313_s10 = scalar_lea.hbm %s1730_s0, 256 }
  0x38   : > { %p1314_p1 = scmp.lt.s32.totalorder %s1558_s13, %s1730_s0  ;;  %p1315_p2 = scmp.lt.s32.totalorder %s1313_s10, %s1308_s18 }
  0x39   : > { %p1311_p5 = pnand %p1310_p0, %p1309_p13 }
  0x3a   : > { %p1316_p6 = por %p1315_p2, %p1314_p1 }
  0x3b   : > { %p1312_p10 = pneg %p1311_p5 }
  0x3d   : > { %p1317_p12 = pnand %p1316_p6, %p1312_p10 }
  0x3f   : > { %1320 = shalt.err (!%p1317_p12)
}
  0x40   : > { %s1321_s12 = scalar_lea.vmem %s247_s15, 128  ;;  %s1410_s8 = smov [#allocation3]  }
  0x41   : > { %p1322_p7 = scmp.ne.s32.totalorder %s247_s15, %s1321_s12  ;;  %s1326_s14 = sshll.u32 %s1410_s8, 4  ;;  %s1327_s14 = int_to_ptr.vmem [resolvable:$false] %s1326_s14 }
  0x42   : > { %s1328_s1 = scalar_lea.vmem %s1327_s14, 256  ;;  %p1329_p13 = scmp.lt.s32.totalorder %s247_s15, %s1327_s14 }
  0x43   : > { %p1324_p9 = pnand %p1322_p7, %p1310_p0  ;;  %p1330_p5 = scmp.lt.s32.totalorder %s1328_s1, %s1321_s12 }
  0x45   : > { %p1325_p3 = pneg %p1324_p9  ;;  %p1331_p4 = por %p1330_p5, %p1329_p13 }
  0x47   : > { %p1332_p8 = pnand %p1331_p4, %p1325_p3 }
  0x49   : > { %1335 = shalt.err (!%p1332_p8)
}
  0x4a   : > { %1173 = dma.hbm_to_vmem [thread:$0]  (!%p1560_p11), %s1558_s13, 128, %s247_s15, %s236_s17  }
  0x4b   : > { %p1750_p10 = scmp.ne.s32.totalorder %s1744_s29, 0 }
  0x4c   : > { %s1581_s18 = sand.u32 (!%p1750_p10), 1, %s1396_s22   ;;  %p1751_p4 = scmp.ne.s32.totalorder (!%p1750_p10), %s1742_s27, 0 }
  0x4d   : > { %262 = sbr.rel (%p1750_p10) target bundleno = 1352 (0x548), region = 44  ;;  %s1040_s20 = sshll.u32 (!%p1750_p10), %s1581_s18, 3 }
  0x4e   : > { %s265_s26 = scalar_lea.sflag (!%p1750_p10), [#allocation4], %s1581_s18  ;;  %s268_s1 = scalar_lea.vmem (!%p1750_p10), [#allocation3], %s1040_s20 }
  0x52   : > { %1379 = dma.done.wait (%p1751_p4), %s265_s26, 128  }
  0x53   : > { %1381 = vsyncadd (%p1751_p4), %s265_s26, 4294967168  ;;  %p1752_p8 = scmp.eq.s32.totalorder %s1484_s25, 0 }
  0x55   : > { %1383 = dma.done.wait (%p1752_p8), [#allocation7], 512   ;;  %p1753_p3 = pmov %p1752_p8 }
  0x56   : > { %v1411_v0 = vmov 0.0   ;;  %vm1412_vm0 = vmmov 0   ;;  %v1236_v1 = vld [vmem:[#allocation6 + $0x8] sm:$0xff]   ;;  %v1237_v2 = vld [vmem:[#allocation6] sm:$0xff]   ;;  %v314_v3 = vld [vmem:[%s268_s1] sm:$0xff]  ;;  %vm339_vm1 = vcmask 261120  }
  0x57   : > { %1385 = vsyncadd (%p1753_p3), [#allocation7], 4294966784  ;;  %1087 = vmatprep.subr.bf16.mxu0 %v1411_v0  ;;  %1091 = vmatprep.mubr.msk.bf16.mxu0 %vm1412_vm0, %v1411_v0  ;;  %v315_v4 = vpack.c.bf16 %v314_v3, %v314_v3  ;;  %v1045_v5 = vld [vmem:[%s1732_s2] ss:$0 sm:$0xff]  ;;  %s1413_s13 = smov 120   ;;  %s1414_s15 = smov 96  }
  0x58   : > { %1095 = vmatprep.subr.bf16.mxu1 %v1411_v0  ;;  %1097 = vmatprep.mubr.msk.bf16.mxu1 %vm1412_vm0, %v1411_v0  ;;  %s1415_s16 = smov 80   ;;  %s1416_s17 = smov 88   ;;  %vm391_vm2 = vcmask 64512   ;;  %vm453_vm4 = vcmask 1043456   ;;  %vm614_vm5 = vcmask 130112   ;;  %vm730_vm6 = vcmask 195712  }
  0x59   : > { %1088 = vmatpush3.bf16.msra.mxu0 %v1236_v1  ;;  %s1417_s10 = smov 72   ;;  %s1418_s11 = smov 112   ;;  %vm846_vm7 = vcmask 261312  }
  0x5a   : > { %1089 = vmatprep.subr.bf16.mxu0 %v1411_v0  ;;  %s1419_s9 = smov 104   ;;  %p309_p11 = scmp.lt.s32.totalorder %s1484_s25, 1 }
  0x5b   : > { %s1420_s27 = smov 56   ;;  %s1421_s29 = smov 64  }
  0x5c   : > { %s310_s12 = scalar_select %p309_p11, %s1484_s25, 1 }
  0x5d   : > { %1090 = vmatpush3.bf16.msra.mxu0 %v1237_v2  ;;  %p1754_p1 = scmp.ne.s32.totalorder %s1748_s30, 0 }
  0x5e   : > { %1101 = vmatprep.subr.bf16.mxu0 %v1411_v0  ;;  %s1044_s8 = sshll.u32 %s310_s12, 1  ;;  %s1062_s12 = sshll.u32 %s1484_s25, 7 }
  0x5f   : > { %s312_s1 = scalar_lea.vmem %s1735_s5, %s1044_s8  ;;  %s308_s8 = scalar_lea.vmem [#allocation9], %s1040_s20 }
  0x60   : > { %1092 = vmatmul.mubr.msk.bf16.vlgmr.msra.gmra.mxu0 %vm339_vm1, %v315_v4  ;;  %v384_v23 = vld [vmem:[%s312_s1] sm:$0x3]  ;;  %s931_s14 = sshll.u32 %s308_s8, 4  ;;  %s918_s25 = scalar_lea.sflag [#allocation5], %s1581_s18  ;;  %s1688_s14 = int_to_ptr.vmem [resolvable:$true] %s931_s14 }
  0x61   : > { %1103 = vmatprep.mubr.msk.bf16.mxu0 %vm1412_vm0, %v1411_v0  ;;  %v385_v24 = vunpack.c.0.s8 %v384_v23  ;;  %s1427_s20 = smov [#allocation9]  }
  0x63   : > { %vm386_vm3 = vcmp.eq.s32.totalorder %v385_v24, 0 }
  0x64   : > { %v387_v25 = vsel %vm386_vm3, -1e+09, %v1411_v0 }
 0x120   : > { %v377_v6 = vpop.f32.mrf.mxu0 }
 0x121   : > { %v378_v7 = vadd.f32 %v1045_v5, %v377_v6 }
 0x122   : > { %v1093_v8 = vpop.f32.mrf.mxu0 }
 0x123   : > { %v1609_v9 = vpack.c.bf16 %v378_v7, %v378_v7 }
 0x124   : > { %v380_v10 = vpop.f32.mrf.mxu0 }
 0x125   : > { %500 = vrot.lane.b32.xlu1 %v1609_v9, %s1413_s13  ;;  %389 = vrot.lane.b32.xlu0 %v1609_v9, %s1414_s15  ;;  %s1422_s13 = smov 40   ;;  %s1423_s15 = smov 48  }
 0x126   : > { %v1094_v11 = vpop.f32.mrf.mxu0 }
 0x129   : > { %618 = vrot.lane.b32.xlu1 %v1609_v9, %s1415_s16  ;;  %502 = vrot.lane.b32.xlu0 %v1609_v9, %s1416_s17  ;;  %s1424_s16 = smov 8   ;;  %s1425_s17 = smov 16  }
 0x12d   : > { %734 = vrot.lane.b32.xlu1 %v1609_v9, %s1417_s10  ;;  %616 = vrot.lane.b32.xlu0 %v1609_v9, %s1418_s11  ;;  %s1426_s10 = smov 24  }
 0x131   : > { %732 = vrot.lane.b32.xlu0 %v1609_v9, %s1419_s9 }
 0x197   : > { %v390_v12 = vpop.permute.xlu0 %389  ;;  %v501_v15 = vpop.permute.xlu1 %500 }
 0x198   : > { %v396_v13 = vsel %vm391_vm2, %v390_v12, 0 }
 0x199   : > { %1096 = vmatpush3.bf16.xpose.msra.mxu1 %v396_v13 }
 0x19a   : > { %1107 = vmatprep.subr.bf16.mxu1 %v1411_v0 }
 0x19b   : > { %v503_v14 = vpop.permute.xlu0 %502  ;;  %v619_v17 = vpop.permute.xlu1 %618 }
 0x19c   : > { %v508_v16 = vsel %vm391_vm2, %v503_v14, 0  ;;  %v624_v18 = vsel %vm391_vm2, %v619_v17, 0 }
 0x19f   : > { %v735_v19 = vpop.permute.xlu1 %734  ;;  %v617_v20 = vpop.permute.xlu0 %616 }
 0x1a0   : > { %1098 = vmatmul.mubr.msk.bf16.vlgmr.msra.gmra.mxu1 %vm391_vm2, %v1609_v9  ;;  %v740_v21 = vsel %vm391_vm2, %v735_v19, 0 }
 0x1a1   : > { %1108 = vmatpush3.bf16.xpose.msra.mxu1 %v508_v16  ;;  %1109 = vmatprep.mubr.msk.bf16.mxu1 %vm1412_vm0, %v1411_v0 }
 0x1a2   : > { %1119 = vmatprep.subr.bf16.mxu1 %v1411_v0 }
 0x1a3   : > { %v733_v22 = vpop.permute.xlu0 %732 }
 0x1a8   : > { %1110 = vmatmul.mubr.msk.bf16.vlgmr.msra.gmra.mxu1 %vm391_vm2, %v501_v15 }
 0x1a9   : > { %1120 = vmatpush3.bf16.xpose.msra.mxu1 %v624_v18  ;;  %1121 = vmatprep.mubr.msk.bf16.mxu1 %vm1412_vm0, %v1411_v0 }
 0x1aa   : > { %1131 = vmatprep.subr.bf16.mxu1 %v1411_v0 }
 0x1b0   : > { %1122 = vmatmul.mubr.msk.bf16.vlgmr.msra.gmra.mxu1 %vm391_vm2, %v617_v20 }
 0x1b1   : > { %1132 = vmatpush3.bf16.xpose.msra.mxu1 %v740_v21  ;;  %1133 = vmatprep.mubr.msk.bf16.mxu1 %vm1412_vm0, %v1411_v0 }
 0x1b2   : > { %1143 = vmatprep.subr.bf16.mxu1 %v1411_v0 }
 0x1b8   : > { %1134 = vmatmul.mubr.msk.bf16.vlgmr.msra.gmra.mxu1 %vm391_vm2, %v733_v22 }
 0x1b9   : > { %1147 = vmatprep.mubr.msk.bf16.mxu1 %vm1412_vm0, %v1411_v0 }
 0x260   : > { %v432_v26 = vpop.f32.mrf.mxu1 }
 0x261   : > { %v433_v27 = vadd.f32 %v432_v26, %v387_v25 }
 0x262   : > { %v1099_v28 = vpop.f32.mrf.mxu1 }
 0x263   : > { %v438_v29 = vsel %vm391_vm2, %v433_v27, -inf }
 0x264   : > { %439 = vmax.xlane.f32.xlu1 %v438_v29  ;;  %v435_v30 = vpop.f32.mrf.mxu1 }
 0x266   : > { %v1100_v31 = vpop.f32.mrf.mxu1 }
 0x268   : > { %v544_v32 = vpop.f32.mrf.mxu1 }
 0x269   : > { %v545_v33 = vadd.f32 %v544_v32, %v387_v25 }
 0x26a   : > { %v1111_v34 = vpop.f32.mrf.mxu1 }
 0x26b   : > { %v550_v35 = vsel %vm391_vm2, %v545_v33, -inf }
 0x26c   : > { %551 = vmax.xlane.f32.xlu0 %v550_v35  ;;  %v547_v36 = vpop.f32.mrf.mxu1 }
 0x26e   : > { %v1112_v37 = vpop.f32.mrf.mxu1 }
 0x270   : > { %v660_v38 = vpop.f32.mrf.mxu1 }
 0x271   : > { %v661_v39 = vadd.f32 %v660_v38, %v387_v25 }
 0x272   : > { %v1123_v40 = vpop.f32.mrf.mxu1 }
 0x273   : > { %v666_v41 = vsel %vm391_vm2, %v661_v39, -inf }
 0x274   : > { %667 = vmax.xlane.f32.xlu0 %v666_v41  ;;  %v663_v42 = vpop.f32.mrf.mxu1  ;;  %v1239_v41 = vld [vmem:[#allocation8] sm:$0xff]  }
 0x275   : > { %560 = vrot.lane.b32.xlu1 %v1609_v9, %s1420_s27  ;;  %s1686_s27 = scalar_lea.hbm %s1736_s6, %s1062_s12 }
 0x276   : > { %v1124_v43 = vpop.f32.mrf.mxu1 }
 0x278   : > { %v776_v44 = vpop.f32.mrf.mxu1 }
 0x279   : > { %v777_v48 = vadd.f32 %v776_v44, %v387_v25 }
 0x27a   : > { %v1135_v45 = vpop.f32.mrf.mxu1 }
 0x27b   : > { %v782_v49 = vsel %vm391_vm2, %v777_v48, -inf }
 0x27c   : > { %v779_v46 = vpop.f32.mrf.mxu1 }
 0x27e   : > { %v1136_v47 = vpop.f32.mrf.mxu1 }
 0x28a   : > { %448 = vrot.lane.b32.xlu0 %v1609_v9, %s1421_s29  ;;  %s1336_s29 = scalar_lea.vmem %s1688_s14, 128 }
 0x28b   : > { %p1337_p0 = scmp.ne.s32.totalorder %s1688_s14, %s1336_s29 }
 0x28d   : > { %p1338_p2 = pnand %p1337_p0, %p1754_p1 }
 0x28e   : > { %792 = vrot.lane.b32.xlu0 %v1609_v9, %s1422_s13  ;;  %s1340_s13 = sshll.u32 %s1427_s20, 4  ;;  %s1341_s13 = int_to_ptr.vmem [resolvable:$false] %s1340_s13 }
 0x28f   : > { %p1339_p6 = pneg %p1338_p2  ;;  %p1343_p12 = scmp.lt.s32.totalorder %s1688_s14, %s1341_s13 }
 0x299   : > { %783 = vmax.xlane.f32.xlu1 %v782_v49 }
 0x2aa   : > { %676 = vrot.lane.b32.xlu1 %v1609_v9, %s1423_s15  ;;  %s1342_s15 = scalar_lea.vmem %s1341_s13, 256 }
 0x2ab   : > { %p1344_p7 = scmp.lt.s32.totalorder %s1342_s15, %s1336_s29 }
 0x2ad   : > { %p1345_p9 = por %p1344_p7, %p1343_p12 }
 0x2af   : > { %p1346_p13 = pnand %p1345_p9, %p1339_p6 }
 0x2ed   : > { %v440_v50 = vpop.xlane.xlu1 %439 }
 0x2ee   : > { %v441_v51 = vsub.f32 %v433_v27, %v440_v50 }
 0x2f0   : > { %v442_v52 = vmul.f32 1.442695, %v441_v51 }
 0x2f1   : > { %v561_v62 = vpop.permute.xlu1 %560 }
 0x2f2   : > { %1240 = vpow2.f32 %v442_v52  ;;  %v566_v1 = vsel %vm453_vm4, %v561_v62, 0 }
 0x2f5   : > { %v552_v53 = vpop.xlane.xlu0 %551 }
 0x2f6   : > { %v553_v54 = vsub.f32 %v545_v33, %v552_v53  ;;  %v1057_v53 = vld [vmem:[%s1734_s4] ss:$0 sm:$0xff] }
 0x2f8   : > { %v554_v55 = vmul.f32 1.442695, %v553_v54 }
 0x2fa   : > { %1242 = vpow2.f32 %v554_v55 }
 0x2fd   : > { %v668_v56 = vpop.xlane.xlu0 %667 }
 0x2fe   : > { %v669_v57 = vsub.f32 %v661_v39, %v668_v56  ;;  %v1238_v39 = vld [vmem:[#allocation8 + $0x8] sm:$0xff]  }
 0x2ff   : > { %v1241_v59 = vpop.eup %1240  ;;  %1144 = vmatpush3.bf16.msra.mxu1 %v1238_v39 }
 0x300   : > { %v670_v58 = vmul.f32 1.442695, %v669_v57  ;;  %v447_v63 = vpack.c.bf16 %v1241_v59, %v1241_v59  ;;  %v444_v4 = vsel %vm391_vm2, %v1241_v59, 0.0  ;;  %1145 = vmatprep.subr.bf16.mxu1 %v1411_v0 }
 0x301   : > { %v449_v60 = vpop.permute.xlu0 %448 }
 0x302   : > { %1244 = vpow2.f32 %v670_v58  ;;  %v455_v61 = vsel %vm453_vm4, %v449_v60, 0 }
 0x303   : > { %1102 = vmatpush3.bf16.msra.mxu0 %v455_v61  ;;  %1146 = vmatpush3.bf16.msra.mxu1 %v1239_v41 }
 0x304   : > { %1113 = vmatprep.subr.bf16.mxu0 %v1411_v0 }
 0x305   : > { %v793_v13 = vpop.permute.xlu0 %792 }
 0x306   : > { %1104 = vmatmul.mubr.msk.bf16.vlgmr.msra.gmra.mxu0 %vm391_vm2, %v447_v63  ;;  %v798_v15 = vsel %vm453_vm4, %v793_v13, 0 }
 0x307   : > { %v1243_v2 = vpop.eup %1242  ;;  %1114 = vmatpush3.bf16.msra.mxu0 %v566_v1  ;;  %1115 = vmatprep.mubr.msk.bf16.mxu0 %vm1412_vm0, %v1411_v0 }
 0x308   : > { %v556_v3 = vsel %vm391_vm2, %v1243_v2, 0.0  ;;  %1125 = vmatprep.subr.bf16.mxu0 %v1411_v0  ;;  %v559_v5 = vpack.c.bf16 %v1243_v2, %v1243_v2 }
 0x309   : > { %557 = vadd.xlane.f32.xlu1 %v556_v3 }
 0x30d   : > { %445 = vadd.xlane.f32.xlu1 %v444_v4 }
 0x30e   : > { %1116 = vmatmul.mubr.msk.bf16.vlgmr.msra.gmra.mxu0 %vm391_vm2, %v559_v5 }
 0x30f   : > { %v1245_v6 = vpop.eup %1244  ;;  %1127 = vmatprep.mubr.msk.bf16.mxu0 %vm1412_vm0, %v1411_v0 }
 0x310   : > { %v672_v7 = vsel %vm391_vm2, %v1245_v6, 0.0  ;;  %v675_v14 = vpack.c.bf16 %v1245_v6, %v1245_v6 }
 0x311   : > { %673 = vadd.xlane.f32.xlu0 %v672_v7 }
 0x322   : > { %v784_v8 = vpop.xlane.xlu1 %783 }
 0x323   : > { %v785_v9 = vsub.f32 %v777_v48, %v784_v8 }
 0x325   : > { %v786_v10 = vmul.f32 1.442695, %v785_v9 }
 0x326   : > { %v677_v11 = vpop.permute.xlu1 %676 }
 0x327   : > { %1246 = vpow2.f32 %v786_v10  ;;  %v682_v12 = vsel %vm453_vm4, %v677_v11, 0 }
 0x328   : > { %1126 = vmatpush3.bf16.msra.mxu0 %v682_v12 }
 0x329   : > { %1137 = vmatprep.subr.bf16.mxu0 %v1411_v0 }
 0x32b   : > { %1128 = vmatmul.mubr.msk.bf16.vlgmr.msra.gmra.mxu0 %vm391_vm2, %v675_v14 }
 0x32c   : > { %1138 = vmatpush3.bf16.msra.mxu0 %v798_v15  ;;  %1139 = vmatprep.mubr.msk.bf16.mxu0 %vm1412_vm0, %v1411_v0 }
 0x334   : > { %v1247_v16 = vpop.eup %1246 }
 0x335   : > { %v788_v17 = vsel %vm391_vm2, %v1247_v16, 0.0  ;;  %v791_v18 = vpack.c.bf16 %v1247_v16, %v1247_v16 }
 0x336   : > { %789 = vadd.xlane.f32.xlu0 %v788_v17 }
 0x337   : > { %1140 = vmatmul.mubr.msk.bf16.vlgmr.msra.gmra.mxu0 %vm391_vm2, %v791_v18 }
 0x392   : > { %v558_v19 = vpop.xlane.xlu1 %557 }
 0x396   : > { %v446_v20 = vpop.xlane.xlu1 %445 }
 0x397   : > { %1248 = vrcp.f32 %v446_v20 }
 0x398   : > { %1250 = vrcp.f32 %v558_v19 }
 0x39a   : > { %v674_v33 = vpop.xlane.xlu0 %673 }
 0x39b   : > { %1252 = vrcp.f32 %v674_v33 }
 0x3a4   : > { %v1249_v21 = vpop.eup %1248 }
 0x3a5   : > { %v1251_v27 = vpop.eup %1250 }
 0x3a8   : > { %v1253_v35 = vpop.eup %1252 }
 0x3bf   : > { %v790_v34 = vpop.xlane.xlu0 %789 }
 0x3c0   : > { %1254 = vrcp.f32 %v790_v34 }
 0x3c6   : > { %v491_v22 = vpop.f32.mrf.mxu0 }
 0x3c7   : > { %v498_v23 = vmul.f32 %v1249_v21, %v491_v22 }
 0x3c8   : > { %v1105_v24 = vpop.f32.mrf.mxu0 }
 0x3c9   : > { %499 = vst.msk [vmem:[#allocation2] sm:$0xff] %vm391_vm2, %v498_v23 }
 0x3ca   : > { %v494_v25 = vpop.f32.mrf.mxu0 }
 0x3cc   : > { %v1106_v26 = vpop.f32.mrf.mxu0 }
 0x3cd   : > { %v1255_v43 = vpop.eup %1254 }
 0x3ce   : > { %v602_v28 = vpop.f32.mrf.mxu0 }
 0x3cf   : > { %v609_v29 = vmul.f32 %v1251_v27, %v602_v28 }
 0x3d0   : > { %v1117_v30 = vpop.f32.mrf.mxu0 }
 0x3d1   : > { %611 = vrot.lane.b32.xlu0 %v609_v29, %s1424_s16 }
 0x3d2   : > { %v605_v31 = vpop.f32.mrf.mxu0 }
 0x3d4   : > { %v1118_v32 = vpop.f32.mrf.mxu0 }
 0x3eb   : > { %v718_v36 = vpop.f32.mrf.mxu0 }
 0x3ec   : > { %v725_v37 = vmul.f32 %v1253_v35, %v718_v36 }
 0x3ed   : > { %v1129_v38 = vpop.f32.mrf.mxu0 }
 0x3ee   : > { %727 = vrot.lane.b32.xlu1 %v725_v37, %s1425_s17 }
 0x3ef   : > { %v721_v40 = vpop.f32.mrf.mxu0 }
 0x3f1   : > { %v1130_v42 = vpop.f32.mrf.mxu0 }
 0x3f7   : > { %v834_v44 = vpop.f32.mrf.mxu0 }
 0x3f8   : > { %v841_v45 = vmul.f32 %v1255_v43, %v834_v44 }
 0x3f9   : > { %v1141_v46 = vpop.f32.mrf.mxu0 }
 0x3fa   : > { %843 = vrot.lane.b32.xlu1 %v841_v45, %s1426_s10 }
 0x3fb   : > { %v837_v47 = vpop.f32.mrf.mxu0 }
 0x3fd   : > { %v1142_v48 = vpop.f32.mrf.mxu0 }
 0x443   : > { %v612_v49 = vpop.permute.xlu0 %611 }
 0x444   : > { %615 = vst.msk [vmem:[#allocation2] sm:$0xff] %vm614_vm5, %v612_v49 }
 0x460   : > { %v728_v50 = vpop.permute.xlu1 %727 }
 0x461   : > { %731 = vst.msk [vmem:[#allocation2] sm:$0xff] %vm730_vm6, %v728_v50 }
 0x46c   : > { %v844_v0 = vpop.permute.xlu1 %843 }
 0x46d   : > { %847 = vst.msk [vmem:[#allocation2] sm:$0xff] %vm846_vm7, %v844_v0 }
 0x474   : > { %v848_v51 = vld [vmem:[#allocation2] sm:$0xff] }
 0x475   : > { %v849_v52 = vpack.c.bf16 %v848_v51, %v848_v51 }
 0x477   : > { %1148 = vmatmul.mubr.msk.bf16.vlgmr.msra.gmra.mxu1 %vm339_vm1, %v849_v52 }
 0x537   : > { %v910_v54 = vpop.f32.mrf.mxu1 }
 0x538   : > { %v911_v55 = vadd.f32 %v1057_v53, %v910_v54 }
 0x539   : > { %v1149_v56 = vpop.f32.mrf.mxu1 }
 0x53a   : > { %916 = vst.msk [vmem:[%s308_s8] sm:$0xff] %vm339_vm1, %v911_v55 }
 0x53b   : > { %v913_v57 = vpop.f32.mrf.mxu1 }
 0x53c   : > { %1349 = shalt.err (!%p1346_p13)
}
 0x53d   : > { %s1350_s16 = scalar_lea.hbm %s1686_s27, 128  ;;  %s1354_s10 = scalar_lea.hbm %s1736_s6, 256 }
 0x53e   : > { %p1351_p5 = scmp.ne.s32.totalorder %s1686_s27, %s1350_s16  ;;  %p1355_p8 = scmp.lt.s32.totalorder %s1686_s27, %s1736_s6 }
 0x53f   : > { %p1356_p3 = scmp.lt.s32.totalorder %s1354_s10, %s1350_s16 }
 0x540   : > { %p1352_p10 = pnand %p1351_p5, %p1754_p1 }
 0x541   : > { %p1357_p11 = por %p1356_p3, %p1355_p8 }
 0x542   : > { %p1353_p4 = pneg %p1352_p10 }
 0x544   : > { %p1358_p0 = pnand %p1357_p11, %p1353_p4 }
 0x546   : > { %1361 = shalt.err (!%p1358_p0)
}
 0x547   : > { %1161 = dma.vmem_to_hbm [thread:$0]  (%p1754_p1), %s1688_s14, 128, %s1686_s27, %s918_s25   ;;  %v1150_v58 = vpop.f32.mrf.mxu1 }
 0x548 PF: > { %s943_s12 = sand.u32 1, %s1392_s21   ;;  %p1755_p2 = scmp.ne.s32.totalorder %s1743_s28, 0 }
 0x549   : > { %p1756_p6 = scmp.ge.s32.totalorder %s1404_s24, 2  ;;  %s944_s8 = scalar_lea.sflag [#allocation5], %s943_s12 }
 0x54b   : > { %p1175_p12 = pnand %p1756_p6, %p1755_p2 }
 0x54d   : > { %p1176_p7 = pneg %p1175_p12 }
 0x54f   : > { %1387 = dma.done.wait (%p1176_p7), %s944_s8, 128  }
 0x550   : > { %1389 = vsyncadd (%p1176_p7), %s944_s8, 4294967168  ;;  %p20_p9 = scmp.ge.s32.totalorder %s1535_s19, 4   ;;  %s1757_s21 = smov %s1396_s22 }
 0x551   : > { %s1758_s22 = smov %s1400_s23  ;;  %s1759_s23 = smov %s1551_s7 }
 0x552   : > { %s1760_s24 = smov %s1535_s19  ;;  %22 = sbr.rel (!%p20_p9) target bundleno = 8 (0x8), region = 100 }
 0x557   :  { %949 = vsyncpa [#allocation4], 1 }
 0x558   :  { %951 = vsyncpa [#allocation4 + $0x1], 1 }
 0x559   :  { %952 = vsyncpa [#allocation7], 1 }
 0x55a   :  { %953 = vsyncpa [#allocation5], 1 }
 0x55b   :  { %955 = vsyncpa [#allocation5 + $0x1], 1 }

</bundles_post_ra>
